<compile_context>
chip_gen: v6e
topology: v6e:2x2x1
jax: 0.10.0
libtpu: 0.0.40
codegen_flags: <defaults>
</compile_context>

<pallas_src>
import math

import jax
import jax.numpy as jnp
from jax import lax
from jax.experimental import pallas as pl
from jax.experimental.pallas import tpu as pltpu


def _round_up(x: int, m: int) -> int:
    return ((x + m - 1) // m) * m


def _linear_policy_kernel(x_ref, wft_ref, bft_ref, wout_ref, bout_ref, o_ref, acc_ref):
    # x_ref:    (B, tk)      bf16  K-slice of the flattened state
    # wft_ref:  (FT, tk)     bf16  K-slice of feature-transformer weight (native (out,in) layout)
    # bft_ref:  (1, FT)      f32
    # wout_ref: (A_pad, FT)  bf16  output_linear weight (lane-padded, native layout)
    # bout_ref: (1, A_pad)   f32
    # o_ref:    (B, A_pad)   f32   logits (lane-padded)
    # acc_ref:  (B, FT)      f32   VMEM accumulator, carried across the K grid axis
    k = pl.program_id(0)

    @pl.when(k == 0)
    def _init():
        # Fold b_ft into the accumulator init so it is added exactly once.
        acc_ref[...] = jnp.broadcast_to(bft_ref[...], acc_ref.shape).astype(jnp.float32)

    # Partial product over this K-slice: (B, tk) . (FT, tk) contracted on K -> (B, FT).
    acc_ref[...] += lax.dot_general(
        x_ref[...], wft_ref[...],
        dimension_numbers=(((1,), (1,)), ((), ())),
        preferred_element_type=jnp.float32,
    )

    @pl.when(k == pl.num_programs(0) - 1)
    def _epilogue():
        feats = acc_ref[...]  # (B, FT) f32; .detach() in transform_state is a forward no-op.
        logits = lax.dot_general(
            feats.astype(jnp.bfloat16), wout_ref[...],
            dimension_numbers=(((1,), (1,)), ((), ())),
            preferred_element_type=jnp.float32,
        ) + bout_ref[...]
        o_ref[...] = logits.astype(o_ref.dtype)


def prepare_linear_policy_params(w_ft, b_ft, w_out, b_out, *, tk=2048):
    """One-time parameter prep (padding + bf16 cast) so the per-call path does no weight rewrites.

    w_ft: (FT, D)  b_ft: (FT,)  w_out: (A, FT)  b_out: (A,)
    """
    FT, D = w_ft.shape
    A = w_out.shape[0]

    tk_eff = max(128, min((tk // 128) * 128, _round_up(D, 128)))
    D_pad = _round_up(D, tk_eff)
    A_pad = _round_up(A, 128)          # lane-dense output / W_out

    w_ft_p = jnp.pad(w_ft.astype(jnp.float32), ((0, 0), (0, D_pad - D))).astype(jnp.bfloat16)
    b_ft_p = b_ft.reshape(1, FT).astype(jnp.float32)
    w_out_p = jnp.pad(w_out.astype(jnp.float32), ((0, A_pad - A), (0, 0))).astype(jnp.bfloat16)
    b_out_p = jnp.pad(b_out.astype(jnp.float32), (0, A_pad - A)).reshape(1, A_pad)

    return {
        "w_ft": w_ft_p, "b_ft": b_ft_p, "w_out": w_out_p, "b_out": b_out_p,
        "D": D, "D_pad": D_pad, "A": A, "A_pad": A_pad, "FT": FT, "tk": tk_eff,
    }


def linear_policy_forward(x_nchw, params):
    """x_nchw: (B, C, H, W).  Returns logits (B, num_actions)."""
    B = x_nchw.shape[0]
    D, D_pad, A, A_pad, FT, tk = (params[n] for n in ("D", "D_pad", "A", "A_pad", "FT", "tk"))

    x_flat = x_nchw.reshape(B, -1).astype(jnp.float32)
    assert x_flat.shape[1] == D
    if D_pad != D:
        x_flat = jnp.pad(x_flat, ((0, 0), (0, D_pad - D)))
    x_bf16 = x_flat.astype(jnp.bfloat16)

    grid_k = D_pad // tk

    # VMEM budget: double-buffered bf16 x / W_ft tiles + resident small operands + f32 accumulator.
    tile_bytes = 2 * (B * tk + FT * tk) * 2
    resident_bytes = B * FT * 4 + A_pad * FT * 2 + FT * 4 + A_pad * 4 + B * A_pad * 4
    vmem_limit = int(max(16 << 20, min(48 << 20, 2 * (tile_bytes + resident_bytes))))

    cost = pl.CostEstimate(
        flops=2 * B * D_pad * FT + 2 * B * FT * A_pad,
        transcendentals=0,
        bytes_accessed=(B * D_pad + FT * D_pad + A_pad * FT) * 2
        + (FT + A_pad + B * A_pad) * 4,
    )

    logits_padded = pl.pallas_call(
        _linear_policy_kernel,
        out_shape=jax.ShapeDtypeStruct((B, A_pad), jnp.float32),
        grid_spec=pltpu.PrefetchScalarGridSpec(
            num_scalar_prefetch=0,
            grid=(grid_k,),
            in_specs=[
                pl.BlockSpec((B, tk), lambda k: (0, k)),       # x K-slice
                pl.BlockSpec((FT, tk), lambda k: (0, k)),      # W_ft K-slice (native layout)
                pl.BlockSpec((1, FT), lambda k: (0, 0)),       # b_ft (resident)
                pl.BlockSpec((A_pad, FT), lambda k: (0, 0)),   # W_out (resident)
                pl.BlockSpec((1, A_pad), lambda k: (0, 0)),    # b_out (resident)
            ],
            out_specs=pl.BlockSpec((B, A_pad), lambda k: (0, 0)),
            scratch_shapes=[pltpu.VMEM((B, FT), jnp.float32)],
        ),
        compiler_params=pltpu.CompilerParams(
            dimension_semantics=("arbitrary",),   # reduction axis
            vmem_limit_bytes=vmem_limit,
        ),
        cost_estimate=cost,
    )(x_bf16, params["w_ft"], params["b_ft"], params["w_out"], params["b_out"])

    return logits_padded[:, :A]


def _xavier_uniform(key, out_features, in_features):
    # torch.nn.init.xavier_uniform_ on an (out, in) Linear weight.
    bound = math.sqrt(6.0 / (in_features + out_features))
    return jax.random.uniform(key, (out_features, in_features),
                              minval=-bound, maxval=bound, dtype=jnp.float32)


if __name__ == "__main__":
    # Small Atari-ish toy shapes (real Atari: D = 4*84*84 = 28224; use tk≈2048 there).
    B, C, H, W = 2, 4, 16, 16
    num_actions = 6
    ft_out = 512
    D = C * H * W

    key = jax.random.PRNGKey(0)
    k_x, k_wft, k_wout, k_bout = jax.random.split(key, 4)

    x = jax.random.normal(k_x, (B, C, H, W), dtype=jnp.float32)

    # feature_transformer stand-in: Linear(D, 512), xavier_uniform weight, zero bias (weights_init_).
    w_ft = _xavier_uniform(k_wft, ft_out, D)              # (512, D)
    b_ft = jnp.zeros((ft_out,), dtype=jnp.float32)

    # --- test 1: module defaults (output_linear weight/bias zeroed in __init__) ----------------
    w_out0 = jnp.zeros((num_actions, ft_out), dtype=jnp.float32)
    b_out0 = jnp.zeros((num_actions,), dtype=jnp.float32)
    params0 = prepare_linear_policy_params(w_ft, b_ft, w_out0, b_out0, tk=512)  # tk=512 -> 2 K-steps
    logits0 = jax.block_until_ready(linear_policy_forward(x, params0))
    assert logits0.shape == (B, num_actions)
    assert jnp.allclose(logits0, jnp.zeros((B, num_actions), jnp.float32), atol=1e-6)

    # --- test 2: nonzero output_linear (exercises the second matmul + b_out) -------------------
    w_out1 = _xavier_uniform(k_wout, num_actions, ft_out)
    b_out1 = 0.1 * jax.random.normal(k_bout, (num_actions,), dtype=jnp.float32)
    params1 = prepare_linear_policy_params(w_ft, b_ft, w_out1, b_out1, tk=512)
    logits1 = jax.block_until_ready(linear_policy_forward(x, params1))

    # Reference in plain JAX with the same bf16 rounding applied to the streamed operands.
    xb = x.reshape(B, -1).astype(jnp.bfloat16).astype(jnp.float32)
    wftb = w_ft.astype(jnp.bfloat16).astype(jnp.float32)
    feats_ref = xb @ wftb.T + b_ft
    woutb1 = w_out1.astype(jnp.bfloat16).astype(jnp.float32)
    ref1 = feats_ref.astype(jnp.bfloat16).astype(jnp.float32) @ woutb1.T + b_out1
    assert logits1.shape == (B, num_actions)
    assert jnp.allclose(logits1, ref1, atol=2e-2, rtol=2e-2)

    print("KERNEL_OK")
</pallas_src>

<mosaic_0001>
module attributes {stable_mosaic.version = 11 : i64} {
  func.func @_linear_policy_kernel(%arg0: i32, %arg1: memref<2x512xbf16, #tpu.memory_space<vmem>>, %arg2: memref<512x512xbf16, #tpu.memory_space<vmem>>, %arg3: memref<1x512xf32, #tpu.memory_space<vmem>>, %arg4: memref<128x512xbf16, #tpu.memory_space<vmem>>, %arg5: memref<1x128xf32, #tpu.memory_space<vmem>>, %arg6: memref<2x128xf32, #tpu.memory_space<vmem>>, %arg7: memref<2x512xf32, #tpu.memory_space<vmem>>) attributes {dimension_semantics = [#tpu.dimension_semantics<arbitrary>], iteration_bounds = array<i64: 2>, scalar_prefetch = 0 : i64, scratch_operands = 1 : i64, tpu.core_type = #tpu.core_type<tc>, window_params = [{transform_indices = @transform_0, window_bounds = array<i64: 2, 512>}, {transform_indices = @transform_1, window_bounds = array<i64: 512, 512>}, {pipeline_mode = #tpu.pipeline_mode<synchronous>, transform_indices = @transform_2, window_bounds = array<i64: 1, 512>}, {pipeline_mode = #tpu.pipeline_mode<synchronous>, transform_indices = @transform_3, window_bounds = array<i64: 128, 512>}, {pipeline_mode = #tpu.pipeline_mode<synchronous>, transform_indices = @transform_4, window_bounds = array<i64: 1, 128>}, {pipeline_mode = #tpu.pipeline_mode<synchronous>, transform_indices = @transform_5, window_bounds = array<i64: 2, 128>}]} {
    %c0_i32 = arith.constant 0 : i32
    %0 = arith.cmpi eq, %arg0, %c0_i32 : i32
    %1 = arith.extui %0 : i1 to i32
    %c0_i32_0 = arith.constant 0 : i32
    %2 = arith.cmpi ne, %1, %c0_i32_0 : i32
    scf.if %2 {
      %c0_9 = arith.constant 0 : index
      %c0_10 = arith.constant 0 : index
      %12 = vector.load %arg3[%c0_9, %c0_10] : memref<1x512xf32, #tpu.memory_space<vmem>>, vector<1x512xf32>
      %13 = vector.shape_cast %12 : vector<1x512xf32> to vector<1x512xf32>
      %14 = vector.broadcast %13 : vector<1x512xf32> to vector<2x512xf32>
      %c0_11 = arith.constant 0 : index
      %c0_12 = arith.constant 0 : index
      %15 = vector.load %arg7[%c0_11, %c0_12] : memref<2x512xf32, #tpu.memory_space<vmem>>, vector<2x512xf32>
      tpu.vector_store %arg7[%c0_11, %c0_12], %14 {strides = array<i32>} : memref<2x512xf32, #tpu.memory_space<vmem>>, vector<2x512xf32>,
    } else {
    }
    %c0 = arith.constant 0 : index
    %c0_1 = arith.constant 0 : index
    %3 = vector.load %arg7[%c0, %c0_1] : memref<2x512xf32, #tpu.memory_space<vmem>>, vector<2x512xf32>
    %c0_2 = arith.constant 0 : index
    %c0_3 = arith.constant 0 : index
    %4 = vector.load %arg1[%c0_2, %c0_3] : memref<2x512xbf16, #tpu.memory_space<vmem>>, vector<2x512xbf16>
    %c0_4 = arith.constant 0 : index
    %c0_5 = arith.constant 0 : index
    %5 = vector.load %arg2[%c0_4, %c0_5] : memref<512x512xbf16, #tpu.memory_space<vmem>>, vector<512x512xbf16>
    %cst = arith.constant dense<0.000000e+00> : vector<2x512xf32>
    %6 = tpu.matmul %4, %5, %cst {dimension_numbers = #tpu.dot_dimension_numbers<[1], [1], [0], [0], [0, 0, 1, 0], [], []>} : vector<2x512xbf16>, vector<512x512xbf16>, vector<2x512xf32> -> vector<2x512xf32>
    %7 = arith.addf %3, %6 : vector<2x512xf32>
    %c0_6 = arith.constant 0 : index
    %c0_7 = arith.constant 0 : index
    %8 = vector.load %arg7[%c0_6, %c0_7] : memref<2x512xf32, #tpu.memory_space<vmem>>, vector<2x512xf32>
    tpu.vector_store %arg7[%c0_6, %c0_7], %7 {strides = array<i32>} : memref<2x512xf32, #tpu.memory_space<vmem>>, vector<2x512xf32>,
    %c1_i32 = arith.constant 1 : i32
    %9 = arith.cmpi eq, %arg0, %c1_i32 : i32
    %10 = arith.extui %9 : i1 to i32
    %c0_i32_8 = arith.constant 0 : i32
    %11 = arith.cmpi ne, %10, %c0_i32_8 : i32
    scf.if %11 {
      %c0_9 = arith.constant 0 : index
      %c0_10 = arith.constant 0 : index
      %12 = vector.load %arg7[%c0_9, %c0_10] : memref<2x512xf32, #tpu.memory_space<vmem>>, vector<2x512xf32>
      %13 = arith.truncf %12 : vector<2x512xf32> to vector<2x512xbf16>
      %c0_11 = arith.constant 0 : index
      %c0_12 = arith.constant 0 : index
      %14 = vector.load %arg4[%c0_11, %c0_12] : memref<128x512xbf16, #tpu.memory_space<vmem>>, vector<128x512xbf16>
      %cst_13 = arith.constant dense<0.000000e+00> : vector<2x128xf32>
      %15 = tpu.matmul %13, %14, %cst_13 {dimension_numbers = #tpu.dot_dimension_numbers<[1], [1], [0], [0], [0, 0, 1, 0], [], []>} : vector<2x512xbf16>, vector<128x512xbf16>, vector<2x128xf32> -> vector<2x128xf32>
      %c0_14 = arith.constant 0 : index
      %c0_15 = arith.constant 0 : index
      %16 = vector.load %arg5[%c0_14, %c0_15] : memref<1x128xf32, #tpu.memory_space<vmem>>, vector<1x128xf32>
      %17 = vector.broadcast %16 : vector<1x128xf32> to vector<2x128xf32>
      %18 = arith.addf %15, %17 : vector<2x128xf32>
      %c0_16 = arith.constant 0 : index
      %c0_17 = arith.constant 0 : index
      %19 = vector.load %arg6[%c0_16, %c0_17] : memref<2x128xf32, #tpu.memory_space<vmem>>, vector<2x128xf32>
      tpu.vector_store %arg6[%c0_16, %c0_17], %18 {strides = array<i32>} : memref<2x128xf32, #tpu.memory_space<vmem>>, vector<2x128xf32>,
    } else {
    }
    return
  }
  func.func @transform_0(%arg0: i32) -> (i32, i32) {
    %c0_i32 = arith.constant 0 : i32
    %c0_i32_0 = arith.constant 0 : i32
    return %c0_i32, %arg0 : i32, i32
  }
  func.func @transform_1(%arg0: i32) -> (i32, i32) {
    %c0_i32 = arith.constant 0 : i32
    %c0_i32_0 = arith.constant 0 : i32
    return %c0_i32, %arg0 : i32, i32
  }
  func.func @transform_2(%arg0: i32) -> (i32, i32) {
    %c0_i32 = arith.constant 0 : i32
    %c0_i32_0 = arith.constant 0 : i32
    %c0_i32_1 = arith.constant 0 : i32
    return %c0_i32, %c0_i32_0 : i32, i32
  }
  func.func @transform_3(%arg0: i32) -> (i32, i32) {
    %c0_i32 = arith.constant 0 : i32
    %c0_i32_0 = arith.constant 0 : i32
    %c0_i32_1 = arith.constant 0 : i32
    return %c0_i32, %c0_i32_0 : i32, i32
  }
  func.func @transform_4(%arg0: i32) -> (i32, i32) {
    %c0_i32 = arith.constant 0 : i32
    %c0_i32_0 = arith.constant 0 : i32
    %c0_i32_1 = arith.constant 0 : i32
    return %c0_i32, %c0_i32_0 : i32, i32
  }
  func.func @transform_5(%arg0: i32) -> (i32, i32) {
    %c0_i32 = arith.constant 0 : i32
    %c0_i32_0 = arith.constant 0 : i32
    %c0_i32_1 = arith.constant 0 : i32
    return %c0_i32, %c0_i32_0 : i32, i32
  }
}

</mosaic_0001>

<bundles_post_ra>
// kernel: tpu_custom_call.1
= control target key start
LH: loop header
LB: loop body
LE: loop exit
PB: predicated region body
PF: predicated region fallthrough
CT: control target
= control target key end

     0   :  { %10 = vsyncpa [#allocation4], 0  ;;  %s2825_s0 = inlined_call_operand.hbm [shape: bf16[2,1024], index: 0, kind: input, shape index: {}]   ;;  %s2826_s1 = inlined_call_operand.hbm [shape: bf16[512,1024], index: 1, kind: input, shape index: {}]   ;;  %s2827_s2 = inlined_call_operand.hbm [shape: f32[1,512], index: 2, kind: input, shape index: {}]   ;;  %s2828_s3 = inlined_call_operand.hbm [shape: bf16[128,512], index: 3, kind: input, shape index: {}]   ;;  %s2829_s4 = inlined_call_operand.vmem [shape: f32[1,128], index: 4, kind: input, shape index: {}]   ;;  %s2830_s5 = inlined_call_operand.hbm [shape: f32[2,128], index: 5, kind: output, shape index: {}]  }
   0x1   :  { %12 = vsyncpa [#allocation4 + $0x1], 0 }
   0x2   :  { %13 = vsyncpa [#allocation7], 0 }
   0x3   :  { %15 = vsyncpa [#allocation7 + $0x1], 0 }
   0x4   :  { %16 = vsyncpa [#allocation10], 0 }
   0x5   :  { %17 = vsyncpa [#allocation5], 0  ;;  %s2467_s18 = smov 0   ;;  %s2469_s19 = smov 0  }
   0x6   :  { %s2471_s20 = smov 0   ;;  %s2473_s21 = smov 0  }
   0x7 LB: > { %s2486_s22 = sadd.s32 4294967295, %s2424_s21   ;;  %p43_p0 = scmp.ne.s32.totalorder %s2416_s19, %s2412_s18  ;;  %s2424_s21 = sphi %s2473_s21, %s2848_s21   ;;  %s2420_s20 = sphi %s2471_s20, %s2847_s20   ;;  %s2416_s19 = sphi %s2469_s19, %s2846_s19   ;;  %s2412_s18 = sphi %s2467_s18, %s2845_s18  }
   0x8   : > { %p2831_p1 = scmp.eq.s32.totalorder %s2486_s22, 0  ;;  %p1738_p2 = scmp.ge.s32.totalorder %s2424_s21, 1 }
   0x9   : > { %p164_p3 = scmp.lt.s32.totalorder %s2424_s21, 3  ;;  %s2426_s25 = smov [#allocation8]  }
   0xa   : > { %p2495_p5 = por %p2831_p1, %p43_p0  ;;  %s177_s26 = sshll.u32 %s2426_s25, 4  ;;  %s178_s26 = int_to_ptr.vmem [resolvable:$true] %s177_s26 }
   0xb   : > { %p2499_p6 = pnand %p1738_p2, %p164_p3  ;;  %s2427_s27 = smov [#allocation9]  }
   0xc   : > { %s2834_s23 = scalar_select %p2495_p5, 1, 0 }
   0xd   : > { %s2835_s24 = scalar_select %p2499_p6, 1, 0 }
   0xe   : > { %p1939_p7 = pneg %p2499_p6  ;;  %s187_s28 = sshll.u32 %s2427_s27, 4  ;;  %s188_s28 = int_to_ptr.vmem [resolvable:$true] %s187_s28 }
   0xf   : > { %s2253_s30 = scalar_lea.vmem %s178_s26, 64  ;;  %p2261_p13 = scmp.lt.s32.totalorder %s178_s26, %s178_s26 }
  0x10   : > { %p2507_p8 = pnand %p1939_p7, %p2831_p1  ;;  %p2254_p10 = scmp.ne.s32.totalorder %s178_s26, %s2253_s30 }
  0x11   : > { %p2262_p0 = scmp.lt.s32.totalorder %s2253_s30, %s2253_s30 }
  0x12   : > { %p2244_p9 = pneg %p2507_p8 }
  0x13   : > { %p2263_p2 = por %p2262_p0, %p2261_p13 }
  0x14   : > { %p2256_p11 = pnand %p2254_p10, %p2244_p9 }
  0x16   : > { %p2257_p12 = pneg %p2256_p11 }
  0x18   : > { %p2264_p3 = pnand %p2263_p2, %p2257_p12 }
  0x1a   : > { %2267 = shalt.err (!%p2264_p3)
}
  0x1b   : > { %1942 = dma.hbm_to_vmem [thread:$0]  (!%p2507_p8), %s2827_s2, 64, %s178_s26, [#allocation7]  }
  0x1c   : > { %s2279_s8 = scalar_lea.vmem %s188_s28, 4096  ;;  %p2287_p10 = scmp.lt.s32.totalorder %s188_s28, %s188_s28 }
  0x1d   : > { %p2280_p7 = scmp.ne.s32.totalorder %s188_s28, %s2279_s8  ;;  %p2288_p11 = scmp.lt.s32.totalorder %s2279_s8, %s2279_s8 }
  0x1f   : > { %p2282_p4 = pnand %p2280_p7, %p2244_p9  ;;  %p2289_p5 = por %p2288_p11, %p2287_p10 }
  0x21   : > { %p2283_p1 = pneg %p2282_p4 }
  0x23   : > { %p2290_p6 = pnand %p2289_p5, %p2283_p1 }
  0x25   : > { %2293 = shalt.err (!%p2290_p6)
}
  0x26   : > { %s2428_s9 = smov 256   ;;  %s2429_s10 = smov 16  }
  0x27   : > { %1945 = dma.hbm_to_vmem [thread:$0]  (!%p2507_p8), %s2828_s3, 4096, %s188_s28, [#allocation10], %s2428_s9, %s2428_s9, %s2429_s10  }
  0x28   : > { %s2533_s13 = sadd.s32 1, %s2424_s21   ;;  %s30_s14 = sadd.s32 1, %s2420_s20 }
  0x29   : > { %s27_s15 = ssub.s32 %s2424_s21, %s2533_s13  ;;  %p37_p1 = scmp.ne.s32.totalorder %s2420_s20, %s2416_s19 }
  0x2a   : > { %p28_p4 = scmp.eq.s32.totalorder %s27_s15, 0  ;;  %p38_p5 = scmp.eq.s32.totalorder %s2424_s21, 0 }
  0x2b   : > { %p1955_p6 = scmp.lt.s32.totalorder %s2424_s21, 2  ;;  %s2543_s16 = sand.u32 1, %s2420_s20  }
  0x2c   : > { %s2546_s17 = scalar_select %p28_p4, %s2420_s20, %s30_s14  }
  0x2d   : > { %p39_p9 = por %p38_p5, %p37_p1  ;;  %s1742_s18 = sshll.u32 %s2543_s16, 2 }
  0x2e   : > { %s1921_s25 = sshll.u32 %s2424_s21, 6  ;;  %s208_s29 = scalar_lea.vmem [#allocation3], %s1742_s18 }
  0x2f   : > { %s2553_s28 = scalar_lea.hbm %s2825_s0, %s1921_s25  ;;  %s216_s30 = sshll.u32 %s208_s29, 4  ;;  %s217_s30 = int_to_ptr.vmem [resolvable:$true] %s216_s30 }
  0x30   : > { %p2555_p8 = pnand %p1955_p6, %p39_p9  ;;  %s1745_s7 = sshll.u32 %s2543_s16, 10 }
  0x31   : > { %s205_s8 = scalar_lea.sflag [#allocation4], %s2543_s16  ;;  %s2294_s11 = scalar_lea.hbm %s2553_s28, 64 }
  0x32   : > { %p2295_p12 = scmp.ne.s32.totalorder %s2553_s28, %s2294_s11  ;;  %p2296_p13 = pneg %p2555_p8 }
  0x33   : > { %s2299_s15 = scalar_lea.hbm %s2825_s0, 128  ;;  %p2300_p3 = scmp.lt.s32.totalorder %s2553_s28, %s2825_s0 }
  0x34   : > { %p2297_p0 = pnand %p2296_p13, %p2295_p12  ;;  %p2301_p7 = scmp.lt.s32.totalorder %s2299_s15, %s2294_s11 }
  0x36   : > { %p2298_p2 = pneg %p2297_p0  ;;  %p2302_p10 = por %p2301_p7, %p2300_p3 }
  0x38   : > { %p2303_p11 = pnand %p2302_p10, %p2298_p2 }
  0x3a   : > { %2306 = shalt.err (!%p2303_p11)
}
  0x3b   : > { %s2307_s16 = scalar_lea.vmem %s217_s30, 64  ;;  %s2430_s26 = smov [#allocation3]  }
  0x3c   : > { %p2308_p1 = scmp.ne.s32.totalorder %s217_s30, %s2307_s16  ;;  %s2312_s27 = sshll.u32 %s2430_s26, 4  ;;  %s2313_s27 = int_to_ptr.vmem [resolvable:$false] %s2312_s27 }
  0x3d   : > { %s2314_s29 = scalar_lea.vmem %s2313_s27, 128  ;;  %p2315_p6 = scmp.lt.s32.totalorder %s217_s30, %s2313_s27 }
  0x3e   : > { %p2310_p4 = pnand %p2308_p1, %p2296_p13  ;;  %p2316_p9 = scmp.lt.s32.totalorder %s2314_s29, %s2307_s16 }
  0x40   : > { %p2311_p5 = pneg %p2310_p4  ;;  %p2317_p12 = por %p2316_p9, %p2315_p6 }
  0x42   : > { %p2318_p0 = pnand %p2317_p12, %p2311_p5 }
  0x44   : > { %2321 = shalt.err (!%p2318_p0)
}
  0x45   : > { %1949 = dma.hbm_to_vmem [thread:$0]  (!%p2555_p8), %s2553_s28, 64, %s217_s30, %s205_s8  }
  0x46   : > { %s227_s11 = scalar_lea.vmem [#allocation6], %s1745_s7  ;;  %s223_s14 = sand.u32 1, %s2424_s21  }
  0x47   : > { %s234_s12 = sshll.u32 %s227_s11, 4  ;;  %s1922_s15 = sshll.u32 %s2424_s21, 8  ;;  %s2582_s12 = int_to_ptr.vmem [resolvable:$true] %s234_s12 }
  0x48   : > { %s2588_s16 = scalar_lea.hbm %s2826_s1, %s1922_s15  ;;  %s2590_s26 = scalar_lea.sflag [#allocation7], %s223_s14 }
  0x49   : > { %s2322_s27 = scalar_lea.hbm %s2588_s16, 16384  ;;  %s2327_s21 = scalar_lea.hbm %s2826_s1, 32768 }
  0x4a   : > { %p2323_p2 = scmp.ne.s32.totalorder %s2588_s16, %s2322_s27  ;;  %p2328_p10 = scmp.lt.s32.totalorder %s2588_s16, %s2826_s1 }
  0x4b   : > { %p2329_p11 = scmp.lt.s32.totalorder %s2327_s21, %s2322_s27 }
  0x4c   : > { %p2325_p3 = pnand %p2323_p2, %p2296_p13 }
  0x4d   : > { %p2330_p1 = por %p2329_p11, %p2328_p10 }
  0x4e   : > { %p2326_p7 = pneg %p2325_p3 }
  0x50   : > { %p2331_p4 = pnand %p2330_p1, %p2326_p7 }
  0x52   : > { %2334 = shalt.err (!%p2331_p4)
}
  0x53   : > { %s2335_s29 = scalar_lea.vmem %s2582_s12, 16384  ;;  %s2431_s11 = smov [#allocation6]  }
  0x54   : > { %p2336_p5 = scmp.ne.s32.totalorder %s2582_s12, %s2335_s29  ;;  %s2340_s14 = sshll.u32 %s2431_s11, 4  ;;  %s2341_s14 = int_to_ptr.vmem [resolvable:$false] %s2340_s14 }
  0x55   : > { %s2342_s15 = scalar_lea.vmem %s2341_s14, 32768  ;;  %p2343_p12 = scmp.lt.s32.totalorder %s2582_s12, %s2341_s14 }
  0x56   : > { %p2338_p6 = pnand %p2336_p5, %p2296_p13  ;;  %p2344_p0 = scmp.lt.s32.totalorder %s2342_s15, %s2335_s29 }
  0x58   : > { %p2339_p9 = pneg %p2338_p6  ;;  %p2345_p2 = por %p2344_p0, %p2343_p12 }
  0x5a   : > { %p2346_p3 = pnand %p2345_p2, %p2339_p9 }
  0x5c   : > { %2349 = shalt.err (!%p2346_p3)
}
  0x5d   : > { %s2432_s18 = smov 512   ;;  %p2838_p13 = scmp.ne.s32.totalorder %s2835_s24, 0 }
  0x5e   : > { %1952 = dma.hbm_to_vmem [thread:$0]  (!%p2555_p8), %s2588_s16, 16384, %s2582_s12, %s2590_s26, %s2432_s18, %s2428_s9, %s2429_s10  }
  0x5f   : > { %246 = sbr.rel (%p2838_p13) target bundleno = 874 (0x36a), region = 40  ;;  %s248_s25 = sand.u32 (!%p2838_p13), 1, %s2416_s19  }
  0x60   : > { %s1749_s27 = sshll.u32 (!%p2838_p13), %s248_s25, 2  ;;  %s249_s28 = scalar_lea.sflag (!%p2838_p13), [#allocation4], %s248_s25 }
  0x61   : > { %s2620_s30 = scalar_lea.vmem (!%p2838_p13), [#allocation3], %s1749_s27  ;;  %p2839_p7 = scmp.ne.s32.totalorder (!%p2838_p13), %s2834_s23, 0 }
  0x64   : > { %2391 = dma.done.wait (%p2839_p7), %s249_s28, 64  }
  0x65   : > { %2393 = vsyncadd (%p2839_p7), %s249_s28, 4294967232  ;;  %s257_s6 = sand.u32 1, %s2486_s22   ;;  %s1750_s21 = sshll.u32 %s248_s25, 10 }
  0x66   : > { %s258_s9 = scalar_lea.sflag [#allocation7], %s257_s6  ;;  %s2627_s10 = scalar_lea.vmem [#allocation6], %s1750_s21 }
  0x67   : > { %2395 = dma.done.wait (%p2839_p7), %s258_s9, 16384  }
  0x68   : > { %2397 = vsyncadd (%p2839_p7), %s258_s9, 4294950912  ;;  %p2840_p8 = scmp.eq.s32.totalorder %s2486_s22, 0 }
  0x6a   : > { %2399 = dma.done.wait (%p2840_p8), [#allocation7], 64   ;;  %p2841_p10 = pmov %p2840_p8 }
  0x6b   : > { %p2842_p11 = pmov %p2840_p8 }
  0x6c   : > { %2401 = vsyncadd (%p2841_p10), [#allocation7], 4294967232 }
  0x6d   : > { %2403 = dma.done.wait (%p2842_p11), [#allocation10], 4096   ;;  %p2843_p1 = pmov %p2840_p8 }
  0x6e   : > { %p2844_p4 = scmp.ne.s32.totalorder %s2486_s22, 0 }
  0x6f   : > { %2405 = vsyncadd (%p2843_p1), [#allocation10], 4294963200 }
  0x70   : > { %302 = sbr.rel (%p2844_p4) target bundleno = 132 (0x84), region = 60 }
  0x75   : > { %v305_v0 = vlaneseq  ;;  %v2433_v1 = vmov 1983009808   ;;  %v303_v4 = vld [vmem:[#allocation8] sm:$0xf] }
  0x76   : > { %v324_v2 = vunpack.c.l.s4 %v2433_v1 }
  0x77   : > { %v306_v3 = vshrl.u32 %v305_v0, 7 }
  0x78   : > { %v325_v5 = vunpack.c.0.s8 %v324_v2 }
  0x79   : > { %v307_v6 = vsub.s32 0, %v306_v3  ;;  %v311_v7 = vsub.s32 1, %v306_v3  ;;  %v315_v8 = vsub.s32 2, %v306_v3  ;;  %v319_v9 = vsub.s32 3, %v306_v3 }
  0x7a   : > { %v328_v10 = vsub.s32 %v325_v5, %v306_v3 }
  0x7b   : > { %v308_v11 = vrot.slane %v303_v4, %v307_v6  ;;  %v312_v12 = vrot.slane %v303_v4, %v311_v7  ;;  %v316_v13 = vrot.slane %v303_v4, %v315_v8  ;;  %v320_v14 = vrot.slane %v303_v4, %v319_v9 }
  0x7d   : > { %v321_v15 = vcombine.low %v308_v11, %v312_v12  ;;  %v322_v16 = vcombine.low %v316_v13, %v320_v14 }
  0x7f   : > { %v329_v17 = vrot.slane %v321_v15, %v328_v10  ;;  %v336_v18 = vrot.slane %v322_v16, %v328_v10 }
  0x81   : > { %v337_v19 = vcombine.low %v329_v17, %v336_v18 }
  0x83   : > { %339 = vst [vmem:[#allocation2] sm:$0xff] %v337_v19 }
  0x84 PF: > { %v2001_v20 = vld [vmem:[%s2627_s10 + $0xe4] ss:$16 sps:$4 sm:$0xff]   ;;  %v2003_v21 = vld [vmem:[%s2627_s10 + $0xec] ss:$16 sps:$4 sm:$0xff]   ;;  %v2005_v22 = vld [vmem:[%s2627_s10 + $0xe0] ss:$16 sps:$4 sm:$0xff]   ;;  %v482_v43 = vlaneseq }
  0x85   : > { %1139 = vmatprep.subr.bf16.mxu0 %v2001_v20  ;;  %v2006_v23 = vld [vmem:[%s2627_s10 + $0xe8] ss:$16 sps:$4 sm:$0xff]   ;;  %1180 = vmatprep.subr.bf16.mxu1 %v2003_v21  ;;  %v2007_v24 = vld [vmem:[%s2627_s10 + $0xc4] ss:$16 sps:$4 sm:$0xff]   ;;  %v2009_v25 = vld [vmem:[%s2627_s10 + $0xcc] ss:$16 sps:$4 sm:$0xff]  }
  0x86   : > { %1140 = vmatpush1.bf16.xpose.msra.mxu0 %v2005_v22  ;;  %1181 = vmatpush1.bf16.xpose.msra.mxu1 %v2006_v23  ;;  %v2011_v26 = vld [vmem:[%s2627_s10 + $0xc0] ss:$16 sps:$4 sm:$0xff]   ;;  %v2012_v27 = vld [vmem:[%s2627_s10 + $0xc8] ss:$16 sps:$4 sm:$0xff]   ;;  %v2013_v28 = vld [vmem:[%s2627_s10 + $0xa4] ss:$16 sps:$4 sm:$0xff]  }
  0x87   : > { %1141 = vmatprep.subr.bf16.mxu0 %v2007_v24  ;;  %1182 = vmatprep.subr.bf16.mxu1 %v2009_v25  ;;  %v2015_v29 = vld [vmem:[%s2627_s10 + $0xac] ss:$16 sps:$4 sm:$0xff]   ;;  %v2017_v30 = vld [vmem:[%s2627_s10 + $0xa0] ss:$16 sps:$4 sm:$0xff]   ;;  %v2018_v31 = vld [vmem:[%s2627_s10 + $0xa8] ss:$16 sps:$4 sm:$0xff]  }
  0x88   : > { %v2019_v32 = vld [vmem:[%s2627_s10 + $0x84] ss:$16 sps:$4 sm:$0xff]   ;;  %v2021_v33 = vld [vmem:[%s2627_s10 + $0x8c] ss:$16 sps:$4 sm:$0xff]   ;;  %v2023_v34 = vld [vmem:[%s2627_s10 + $0x80] ss:$16 sps:$4 sm:$0xff]  }
  0x89   : > { %v2024_v35 = vld [vmem:[%s2627_s10 + $0x88] ss:$16 sps:$4 sm:$0xff]   ;;  %v2025_v36 = vld [vmem:[%s2627_s10 + $0x64] ss:$16 sps:$4 sm:$0xff]   ;;  %v2027_v37 = vld [vmem:[%s2627_s10 + $0x6c] ss:$16 sps:$4 sm:$0xff]  }
  0x8a   : > { %v2029_v38 = vld [vmem:[%s2627_s10 + $0x60] ss:$16 sps:$4 sm:$0xff]   ;;  %v2030_v39 = vld [vmem:[%s2627_s10 + $0x68] ss:$16 sps:$4 sm:$0xff]   ;;  %v2031_v40 = vld [vmem:[%s2627_s10 + $0x44] ss:$16 sps:$4 sm:$0xff]  }
  0x8b   : > { %v2434_v41 = vmov 1966171168   ;;  %v2033_v44 = vld [vmem:[%s2627_s10 + $0x4c] ss:$16 sps:$4 sm:$0xff]   ;;  %v2665_v46 = vshrl.u32 %v482_v43, 7  ;;  %p1883_p5 = scmp.ne.s32.totalorder %s2486_s22, 1 }
  0x8c   : > { %v480_v42 = vunpack.c.l.s4 %v2434_v41  ;;  %v2035_v47 = vld [vmem:[%s2627_s10 + $0x40] ss:$16 sps:$4 sm:$0xff]   ;;  %v2036_v48 = vld [vmem:[%s2627_s10 + $0x48] ss:$16 sps:$4 sm:$0xff]   ;;  %v2037_v49 = vld [vmem:[%s2627_s10 + $0x24] ss:$16 sps:$4 sm:$0xff]  }
  0x8d   : > { %v2039_v51 = vld [vmem:[%s2627_s10 + $0x2c] ss:$16 sps:$4 sm:$0xff]   ;;  %v2041_v56 = vld [vmem:[%s2627_s10 + $0x20] ss:$16 sps:$4 sm:$0xff]   ;;  %v2042_v57 = vld [vmem:[%s2627_s10 + $0x28] ss:$16 sps:$4 sm:$0xff]  }
  0x8e   : > { %1142 = vmatpush1.bf16.xpose.msra.mxu0 %v2011_v26  ;;  %1183 = vmatpush1.bf16.xpose.msra.mxu1 %v2012_v27  ;;  %v481_v45 = vunpack.c.0.s8 %v480_v42  ;;  %v1754_v52 = vld.sshfl [vmem:[%s2620_s30] sm:$0x33 pattern:$0x75316420]  ;;  %v2043_v59 = vld [vmem:[%s2627_s10 + $0x4] ss:$16 sps:$4 sm:$0xff]  }
  0x8f   : > { %1143 = vmatprep.subr.bf16.mxu0 %v2013_v28  ;;  %1184 = vmatprep.subr.bf16.mxu1 %v2015_v29  ;;  %v478_v53 = vcombine.high %v1754_v52, %v1754_v52  ;;  %v2045_v60 = vld [vmem:[%s2627_s10 + $0xc] ss:$16 sps:$4 sm:$0xff]   ;;  %v2047_v61 = vld [vmem:[%s2627_s10] ss:$16 sps:$4 sm:$0xff]   ;;  %v2048_v62 = vld [vmem:[%s2627_s10 + $0x8] ss:$16 sps:$4 sm:$0xff]  }
  0x90   : > { %v484_v50 = vsub.s32 %v481_v45, %v2665_v46  ;;  %v2049_v63 = vld [vmem:[%s2627_s10 + $0x1e4] ss:$16 sps:$4 sm:$0xff]   ;;  %v2051_v0 = vld [vmem:[%s2627_s10 + $0x1ec] ss:$16 sps:$4 sm:$0xff]   ;;  %v2053_v1 = vld [vmem:[%s2627_s10 + $0x1e0] ss:$16 sps:$4 sm:$0xff]  }
  0x91   : > { %v2054_v2 = vld [vmem:[%s2627_s10 + $0x1e8] ss:$16 sps:$4 sm:$0xff]   ;;  %v2055_v3 = vld [vmem:[%s2627_s10 + $0x1c4] ss:$16 sps:$4 sm:$0xff]   ;;  %v2057_v4 = vld [vmem:[%s2627_s10 + $0x1cc] ss:$16 sps:$4 sm:$0xff]  }
  0x92   : > { %v2673_v54 = vrot.slane %v1754_v52, %v484_v50  ;;  %v2675_v55 = vrot.slane %v478_v53, %v484_v50  ;;  %v2059_v5 = vld [vmem:[%s2627_s10 + $0x1c0] ss:$16 sps:$4 sm:$0xff]   ;;  %v2060_v6 = vld [vmem:[%s2627_s10 + $0x1c8] ss:$16 sps:$4 sm:$0xff]   ;;  %v2061_v7 = vld [vmem:[%s2627_s10 + $0x1a4] ss:$16 sps:$4 sm:$0xff]  }
  0x93   : > { %v2063_v8 = vld [vmem:[%s2627_s10 + $0x1ac] ss:$16 sps:$4 sm:$0xff]   ;;  %v2065_v9 = vld [vmem:[%s2627_s10 + $0x1a0] ss:$16 sps:$4 sm:$0xff]   ;;  %v2066_v10 = vld [vmem:[%s2627_s10 + $0x1a8] ss:$16 sps:$4 sm:$0xff]  }
  0x94   : > { %1171 = vmatprep.mubr.bf16.mxu0 %v2675_v55  ;;  %v2682_v58 = vcombine.high %v2675_v55, %v2675_v55  ;;  %v2067_v11 = vld [vmem:[%s2627_s10 + $0x184] ss:$16 sps:$4 sm:$0xff]   ;;  %v2069_v12 = vld [vmem:[%s2627_s10 + $0x18c] ss:$16 sps:$4 sm:$0xff]   ;;  %v2071_v13 = vld [vmem:[%s2627_s10 + $0x180] ss:$16 sps:$4 sm:$0xff]  }
  0x95   : > { %v2072_v14 = vld [vmem:[%s2627_s10 + $0x188] ss:$16 sps:$4 sm:$0xff]   ;;  %v2073_v15 = vld [vmem:[%s2627_s10 + $0x164] ss:$16 sps:$4 sm:$0xff]   ;;  %v2075_v16 = vld [vmem:[%s2627_s10 + $0x16c] ss:$16 sps:$4 sm:$0xff]  }
  0x96   : > { %1144 = vmatpush1.bf16.xpose.msra.mxu0 %v2017_v30  ;;  %1185 = vmatpush1.bf16.xpose.msra.mxu1 %v2018_v31  ;;  %v2077_v17 = vld [vmem:[%s2627_s10 + $0x160] ss:$16 sps:$4 sm:$0xff]   ;;  %v2078_v18 = vld [vmem:[%s2627_s10 + $0x168] ss:$16 sps:$4 sm:$0xff]   ;;  %v2079_v19 = vld [vmem:[%s2627_s10 + $0x144] ss:$16 sps:$4 sm:$0xff]  }
  0x97   : > { %1145 = vmatprep.subr.bf16.mxu0 %v2019_v32  ;;  %1186 = vmatprep.subr.bf16.mxu1 %v2021_v33  ;;  %v2081_v20 = vld [vmem:[%s2627_s10 + $0x14c] ss:$16 sps:$4 sm:$0xff]   ;;  %v2083_v21 = vld [vmem:[%s2627_s10 + $0x140] ss:$16 sps:$4 sm:$0xff]   ;;  %v2084_v22 = vld [vmem:[%s2627_s10 + $0x148] ss:$16 sps:$4 sm:$0xff]   ;;  %v2725_v33 = vcombine.high %v2673_v54, %v2673_v54 }
  0x98   : > { %1212 = vmatprep.mubr.bf16.mxu1 %v2682_v58  ;;  %v2085_v23 = vld [vmem:[%s2627_s10 + $0x124] ss:$16 sps:$4 sm:$0xff]   ;;  %v2087_v24 = vld [vmem:[%s2627_s10 + $0x12c] ss:$16 sps:$4 sm:$0xff]   ;;  %v2089_v25 = vld [vmem:[%s2627_s10 + $0x120] ss:$16 sps:$4 sm:$0xff]  }
  0x99   : > { %v2090_v26 = vld [vmem:[%s2627_s10 + $0x128] ss:$16 sps:$4 sm:$0xff]   ;;  %v2091_v27 = vld [vmem:[%s2627_s10 + $0x104] ss:$16 sps:$4 sm:$0xff]   ;;  %v2093_v28 = vld [vmem:[%s2627_s10 + $0x10c] ss:$16 sps:$4 sm:$0xff]  }
  0x9a   : > { %v2095_v29 = vld [vmem:[%s2627_s10 + $0x100] ss:$16 sps:$4 sm:$0xff]   ;;  %v2096_v30 = vld [vmem:[%s2627_s10 + $0x108] ss:$16 sps:$4 sm:$0xff]   ;;  %v2099_v31 = vld [vmem:[%s2627_s10 + $0x2e4] ss:$16 sps:$4 sm:$0xff]  }
  0x9b   : > { %v2102_v32 = vld [vmem:[%s2627_s10 + $0x2ec] ss:$16 sps:$4 sm:$0xff]   ;;  %v2109_v42 = vld [vmem:[%s2627_s10 + $0x2a0] ss:$16 sps:$4 sm:$0xff]   ;;  %v2112_v43 = vld [vmem:[%s2627_s10 + $0x2a8] ss:$16 sps:$4 sm:$0xff]  }
  0x9c   : > { %v2114_v41 = vld [vmem:[%s2627_s10 + $0x2ac] ss:$16 sps:$4 sm:$0xff]   ;;  %v2124_v52 = vld [vmem:[%s2627_s10 + $0x268] ss:$16 sps:$4 sm:$0xff]   ;;  %v2129_v53 = vld [vmem:[%s2627_s10 + $0x244] ss:$16 sps:$4 sm:$0xff]  }
  0x9d   : > { %v2120_v45 = vld [vmem:[%s2627_s10 + $0x28c] ss:$16 sps:$4 sm:$0xff]  }
  0x9e   : > { %1146 = vmatpush1.bf16.xpose.msra.mxu0 %v2023_v34  ;;  %1187 = vmatpush1.bf16.xpose.msra.mxu1 %v2024_v35  ;;  %v2097_v34 = vld [vmem:[%s2627_s10 + $0x2e0] ss:$16 sps:$4 sm:$0xff]   ;;  %v2100_v35 = vld [vmem:[%s2627_s10 + $0x2e8] ss:$16 sps:$4 sm:$0xff]   ;;  %v2126_v50 = vld [vmem:[%s2627_s10 + $0x26c] ss:$16 sps:$4 sm:$0xff]  }
  0x9f   : > { %1147 = vmatprep.subr.bf16.mxu0 %v2025_v36  ;;  %1188 = vmatprep.subr.bf16.mxu1 %v2027_v37  ;;  %v2105_v36 = vld [vmem:[%s2627_s10 + $0x2c4] ss:$16 sps:$4 sm:$0xff]   ;;  %v2108_v37 = vld [vmem:[%s2627_s10 + $0x2cc] ss:$16 sps:$4 sm:$0xff]  }
  0xa6   : > { %1148 = vmatpush1.bf16.xpose.msra.mxu0 %v2029_v38  ;;  %1189 = vmatpush1.bf16.xpose.msra.mxu1 %v2030_v39  ;;  %v2103_v38 = vld [vmem:[%s2627_s10 + $0x2c0] ss:$16 sps:$4 sm:$0xff]   ;;  %v2106_v39 = vld [vmem:[%s2627_s10 + $0x2c8] ss:$16 sps:$4 sm:$0xff]  }
  0xa7   : > { %1149 = vmatprep.subr.bf16.mxu0 %v2031_v40  ;;  %1190 = vmatprep.subr.bf16.mxu1 %v2033_v44  ;;  %v2111_v40 = vld [vmem:[%s2627_s10 + $0x2a4] ss:$16 sps:$4 sm:$0xff]  }
  0xa8   : > { %v2117_v44 = vld [vmem:[%s2627_s10 + $0x284] ss:$16 sps:$4 sm:$0xff]  }
  0xae   : > { %1150 = vmatpush1.bf16.xpose.msra.mxu0 %v2035_v47  ;;  %1191 = vmatpush1.bf16.xpose.msra.mxu1 %v2036_v48  ;;  %v2115_v47 = vld [vmem:[%s2627_s10 + $0x280] ss:$16 sps:$4 sm:$0xff]   ;;  %v2118_v48 = vld [vmem:[%s2627_s10 + $0x288] ss:$16 sps:$4 sm:$0xff]  }
  0xaf   : > { %1151 = vmatprep.subr.bf16.mxu0 %v2037_v49  ;;  %1192 = vmatprep.subr.bf16.mxu1 %v2039_v51  ;;  %v2123_v49 = vld [vmem:[%s2627_s10 + $0x264] ss:$16 sps:$4 sm:$0xff]   ;;  %v2121_v51 = vld [vmem:[%s2627_s10 + $0x260] ss:$16 sps:$4 sm:$0xff]  }
  0xb6   : > { %1152 = vmatpush1.bf16.xpose.msra.mxu0 %v2041_v56  ;;  %1193 = vmatpush1.bf16.xpose.msra.mxu1 %v2042_v57  ;;  %v2127_v56 = vld [vmem:[%s2627_s10 + $0x240] ss:$16 sps:$4 sm:$0xff]   ;;  %v2130_v57 = vld [vmem:[%s2627_s10 + $0x248] ss:$16 sps:$4 sm:$0xff]  }
  0xb7   : > { %1153 = vmatprep.subr.bf16.mxu0 %v2043_v59  ;;  %1194 = vmatprep.subr.bf16.mxu1 %v2045_v60  ;;  %v2138_v59 = vld [vmem:[%s2627_s10 + $0x22c] ss:$16 sps:$4 sm:$0xff]   ;;  %v2133_v60 = vld [vmem:[%s2627_s10 + $0x220] ss:$16 sps:$4 sm:$0xff]  }
  0xbe   : > { %1154 = vmatpush1.bf16.xpose.msra.mxu0 %v2047_v61  ;;  %1195 = vmatpush1.bf16.xpose.msra.mxu1 %v2048_v62  ;;  %v2136_v61 = vld [vmem:[%s2627_s10 + $0x228] ss:$16 sps:$4 sm:$0xff]   ;;  %v2141_v62 = vld [vmem:[%s2627_s10 + $0x204] ss:$16 sps:$4 sm:$0xff]  }
  0xbf   : > { %1155 = vmatprep.subr.bf16.mxu0 %v2049_v63  ;;  %1196 = vmatprep.subr.bf16.mxu1 %v2051_v0  ;;  %v2144_v63 = vld [vmem:[%s2627_s10 + $0x20c] ss:$16 sps:$4 sm:$0xff]   ;;  %v2139_v0 = vld [vmem:[%s2627_s10 + $0x200] ss:$16 sps:$4 sm:$0xff]  }
  0xc6   : > { %1156 = vmatpush2.bf16.xpose.msra.mxu0 %v2053_v1  ;;  %1197 = vmatpush2.bf16.xpose.msra.mxu1 %v2054_v2  ;;  %v2142_v1 = vld [vmem:[%s2627_s10 + $0x208] ss:$16 sps:$4 sm:$0xff]   ;;  %v2147_v2 = vld [vmem:[%s2627_s10 + $0x3e4] ss:$16 sps:$4 sm:$0xff]  }
  0xc7   : > { %1157 = vmatprep.subr.bf16.mxu0 %v2055_v3  ;;  %1198 = vmatprep.subr.bf16.mxu1 %v2057_v4  ;;  %v2150_v3 = vld [vmem:[%s2627_s10 + $0x3ec] ss:$16 sps:$4 sm:$0xff]   ;;  %v2145_v4 = vld [vmem:[%s2627_s10 + $0x3e0] ss:$16 sps:$4 sm:$0xff]  }
  0xce   : > { %1158 = vmatpush2.bf16.xpose.msra.mxu0 %v2059_v5  ;;  %1199 = vmatpush2.bf16.xpose.msra.mxu1 %v2060_v6  ;;  %v2148_v5 = vld [vmem:[%s2627_s10 + $0x3e8] ss:$16 sps:$4 sm:$0xff]   ;;  %v2153_v6 = vld [vmem:[%s2627_s10 + $0x3c4] ss:$16 sps:$4 sm:$0xff]  }
  0xcf   : > { %1159 = vmatprep.subr.bf16.mxu0 %v2061_v7  ;;  %1200 = vmatprep.subr.bf16.mxu1 %v2063_v8  ;;  %v2156_v7 = vld [vmem:[%s2627_s10 + $0x3cc] ss:$16 sps:$4 sm:$0xff]   ;;  %v2151_v8 = vld [vmem:[%s2627_s10 + $0x3c0] ss:$16 sps:$4 sm:$0xff]  }
  0xd6   : > { %1160 = vmatpush2.bf16.xpose.msra.mxu0 %v2065_v9  ;;  %1201 = vmatpush2.bf16.xpose.msra.mxu1 %v2066_v10  ;;  %v2154_v9 = vld [vmem:[%s2627_s10 + $0x3c8] ss:$16 sps:$4 sm:$0xff]   ;;  %v2159_v10 = vld [vmem:[%s2627_s10 + $0x3a4] ss:$16 sps:$4 sm:$0xff]  }
  0xd7   : > { %1161 = vmatprep.subr.bf16.mxu0 %v2067_v11  ;;  %1202 = vmatprep.subr.bf16.mxu1 %v2069_v12  ;;  %v2162_v11 = vld [vmem:[%s2627_s10 + $0x3ac] ss:$16 sps:$4 sm:$0xff]   ;;  %v2157_v12 = vld [vmem:[%s2627_s10 + $0x3a0] ss:$16 sps:$4 sm:$0xff]  }
  0xde   : > { %1162 = vmatpush2.bf16.xpose.msra.mxu0 %v2071_v13  ;;  %1203 = vmatpush2.bf16.xpose.msra.mxu1 %v2072_v14  ;;  %v2160_v13 = vld [vmem:[%s2627_s10 + $0x3a8] ss:$16 sps:$4 sm:$0xff]   ;;  %v2165_v14 = vld [vmem:[%s2627_s10 + $0x384] ss:$16 sps:$4 sm:$0xff]  }
  0xdf   : > { %1163 = vmatprep.subr.bf16.mxu0 %v2073_v15  ;;  %1204 = vmatprep.subr.bf16.mxu1 %v2075_v16  ;;  %v2168_v15 = vld [vmem:[%s2627_s10 + $0x38c] ss:$16 sps:$4 sm:$0xff]   ;;  %v2163_v16 = vld [vmem:[%s2627_s10 + $0x380] ss:$16 sps:$4 sm:$0xff]  }
  0xe6   : > { %1164 = vmatpush2.bf16.xpose.msra.mxu0 %v2077_v17  ;;  %1205 = vmatpush2.bf16.xpose.msra.mxu1 %v2078_v18  ;;  %v2166_v17 = vld [vmem:[%s2627_s10 + $0x388] ss:$16 sps:$4 sm:$0xff]   ;;  %v2171_v18 = vld [vmem:[%s2627_s10 + $0x364] ss:$16 sps:$4 sm:$0xff]  }
  0xe7   : > { %1165 = vmatprep.subr.bf16.mxu0 %v2079_v19  ;;  %1206 = vmatprep.subr.bf16.mxu1 %v2081_v20  ;;  %v2174_v19 = vld [vmem:[%s2627_s10 + $0x36c] ss:$16 sps:$4 sm:$0xff]   ;;  %v2169_v20 = vld [vmem:[%s2627_s10 + $0x360] ss:$16 sps:$4 sm:$0xff]  }
  0xee   : > { %1166 = vmatpush2.bf16.xpose.msra.mxu0 %v2083_v21  ;;  %1207 = vmatpush2.bf16.xpose.msra.mxu1 %v2084_v22  ;;  %v2172_v21 = vld [vmem:[%s2627_s10 + $0x368] ss:$16 sps:$4 sm:$0xff]   ;;  %v2177_v22 = vld [vmem:[%s2627_s10 + $0x344] ss:$16 sps:$4 sm:$0xff]  }
  0xef   : > { %1167 = vmatprep.subr.bf16.mxu0 %v2085_v23  ;;  %1208 = vmatprep.subr.bf16.mxu1 %v2087_v24  ;;  %v2180_v23 = vld [vmem:[%s2627_s10 + $0x34c] ss:$16 sps:$4 sm:$0xff]   ;;  %v2175_v24 = vld [vmem:[%s2627_s10 + $0x340] ss:$16 sps:$4 sm:$0xff]  }
  0xf6   : > { %1168 = vmatpush2.bf16.xpose.msra.mxu0 %v2089_v25  ;;  %1209 = vmatpush2.bf16.xpose.msra.mxu1 %v2090_v26  ;;  %v2178_v25 = vld [vmem:[%s2627_s10 + $0x348] ss:$16 sps:$4 sm:$0xff]   ;;  %v2183_v26 = vld [vmem:[%s2627_s10 + $0x324] ss:$16 sps:$4 sm:$0xff]  }
  0xf7   : > { %1169 = vmatprep.subr.bf16.mxu0 %v2091_v27  ;;  %1210 = vmatprep.subr.bf16.mxu1 %v2093_v28  ;;  %v2186_v27 = vld [vmem:[%s2627_s10 + $0x32c] ss:$16 sps:$4 sm:$0xff]   ;;  %v2181_v28 = vld [vmem:[%s2627_s10 + $0x320] ss:$16 sps:$4 sm:$0xff]  }
  0xfe   : > { %1170 = vmatpush2.bf16.xpose.msra.mxu0 %v2095_v29  ;;  %1211 = vmatpush2.bf16.xpose.msra.mxu1 %v2096_v30  ;;  %v2184_v29 = vld [vmem:[%s2627_s10 + $0x328] ss:$16 sps:$4 sm:$0xff]   ;;  %v2189_v30 = vld [vmem:[%s2627_s10 + $0x304] ss:$16 sps:$4 sm:$0xff]  }
  0xff   : > { %1221 = vmatprep.subr.bf16.mxu0 %v2099_v31  ;;  %1262 = vmatprep.subr.bf16.mxu1 %v2102_v32  ;;  %v2192_v31 = vld [vmem:[%s2627_s10 + $0x30c] ss:$16 sps:$4 sm:$0xff]   ;;  %v2187_v32 = vld [vmem:[%s2627_s10 + $0x300] ss:$16 sps:$4 sm:$0xff]  }
 0x105   : > { %1172 = vmatmul.mubr.bf16.vlgmr.msra.gmra.mxu0 %v2673_v54  ;;  %1213 = vmatmul.mubr.bf16.vlgmr.msra.gmra.mxu1 %v2725_v33 }
 0x106   : > { %1222 = vmatpush1.bf16.xpose.msra.mxu0 %v2097_v34  ;;  %1263 = vmatpush1.bf16.xpose.msra.mxu1 %v2100_v35  ;;  %v2190_v34 = vld [vmem:[%s2627_s10 + $0x308] ss:$16 sps:$4 sm:$0xff]  }
 0x107   : > { %1223 = vmatprep.subr.bf16.mxu0 %v2105_v36  ;;  %1264 = vmatprep.subr.bf16.mxu1 %v2108_v37 }
 0x108   : > { %1253 = vmatprep.mubr.bf16.mxu0 %v2675_v55  ;;  %1294 = vmatprep.mubr.bf16.mxu1 %v2682_v58  ;;  %v2132_v55 = vld [vmem:[%s2627_s10 + $0x24c] ss:$16 sps:$4 sm:$0xff]   ;;  %v2135_v58 = vld [vmem:[%s2627_s10 + $0x224] ss:$16 sps:$4 sm:$0xff]  }
 0x10e   : > { %1224 = vmatpush1.bf16.xpose.msra.mxu0 %v2103_v38  ;;  %1265 = vmatpush1.bf16.xpose.msra.mxu1 %v2106_v39 }
 0x10f   : > { %1225 = vmatprep.subr.bf16.mxu0 %v2111_v40  ;;  %1266 = vmatprep.subr.bf16.mxu1 %v2114_v41 }
 0x116   : > { %1226 = vmatpush1.bf16.xpose.msra.mxu0 %v2109_v42  ;;  %1267 = vmatpush1.bf16.xpose.msra.mxu1 %v2112_v43 }
 0x117   : > { %1227 = vmatprep.subr.bf16.mxu0 %v2117_v44  ;;  %1268 = vmatprep.subr.bf16.mxu1 %v2120_v45 }
 0x11e   : > { %1228 = vmatpush1.bf16.xpose.msra.mxu0 %v2115_v47  ;;  %1269 = vmatpush1.bf16.xpose.msra.mxu1 %v2118_v48  ;;  %v2435_v47 = vmov 1983009808  }
 0x11f   : > { %1229 = vmatprep.subr.bf16.mxu0 %v2123_v49  ;;  %1270 = vmatprep.subr.bf16.mxu1 %v2126_v50  ;;  %v1310_v48 = vunpack.c.l.s4 %v2435_v47 }
 0x121   : > { %v1311_v49 = vunpack.c.0.s8 %v1310_v48 }
 0x126   : > { %1230 = vmatpush1.bf16.xpose.msra.mxu0 %v2121_v51  ;;  %1271 = vmatpush1.bf16.xpose.msra.mxu1 %v2124_v52 }
 0x127   : > { %1231 = vmatprep.subr.bf16.mxu0 %v2129_v53  ;;  %1272 = vmatprep.subr.bf16.mxu1 %v2132_v55 }
 0x12e   : > { %1232 = vmatpush1.bf16.xpose.msra.mxu0 %v2127_v56  ;;  %1273 = vmatpush1.bf16.xpose.msra.mxu1 %v2130_v57 }
 0x12f   : > { %1233 = vmatprep.subr.bf16.mxu0 %v2135_v58  ;;  %1274 = vmatprep.subr.bf16.mxu1 %v2138_v59 }
 0x136   : > { %1234 = vmatpush1.bf16.xpose.msra.mxu0 %v2133_v60  ;;  %1275 = vmatpush1.bf16.xpose.msra.mxu1 %v2136_v61 }
 0x137   : > { %1235 = vmatprep.subr.bf16.mxu0 %v2141_v62  ;;  %1276 = vmatprep.subr.bf16.mxu1 %v2144_v63  ;;  %v340_v63 = vld [vmem:[#allocation2] sm:$0xff] }
 0x13e   : > { %1236 = vmatpush1.bf16.xpose.msra.mxu0 %v2139_v0  ;;  %1277 = vmatpush1.bf16.xpose.msra.mxu1 %v2142_v1 }
 0x13f   : > { %1237 = vmatprep.subr.bf16.mxu0 %v2147_v2  ;;  %1278 = vmatprep.subr.bf16.mxu1 %v2150_v3 }
 0x146   : > { %1238 = vmatpush2.bf16.xpose.msra.mxu0 %v2145_v4  ;;  %1279 = vmatpush2.bf16.xpose.msra.mxu1 %v2148_v5 }
 0x147   : > { %1239 = vmatprep.subr.bf16.mxu0 %v2153_v6  ;;  %1280 = vmatprep.subr.bf16.mxu1 %v2156_v7 }
 0x14e   : > { %1240 = vmatpush2.bf16.xpose.msra.mxu0 %v2151_v8  ;;  %1281 = vmatpush2.bf16.xpose.msra.mxu1 %v2154_v9 }
 0x14f   : > { %1241 = vmatprep.subr.bf16.mxu0 %v2159_v10  ;;  %1282 = vmatprep.subr.bf16.mxu1 %v2162_v11 }
 0x156   : > { %1242 = vmatpush2.bf16.xpose.msra.mxu0 %v2157_v12  ;;  %1283 = vmatpush2.bf16.xpose.msra.mxu1 %v2160_v13 }
 0x157   : > { %1243 = vmatprep.subr.bf16.mxu0 %v2165_v14  ;;  %1284 = vmatprep.subr.bf16.mxu1 %v2168_v15 }
 0x15e   : > { %1244 = vmatpush2.bf16.xpose.msra.mxu0 %v2163_v16  ;;  %1285 = vmatpush2.bf16.xpose.msra.mxu1 %v2166_v17 }
 0x15f   : > { %1245 = vmatprep.subr.bf16.mxu0 %v2171_v18  ;;  %1286 = vmatprep.subr.bf16.mxu1 %v2174_v19 }
 0x166   : > { %1246 = vmatpush2.bf16.xpose.msra.mxu0 %v2169_v20  ;;  %1287 = vmatpush2.bf16.xpose.msra.mxu1 %v2172_v21 }
 0x167   : > { %1247 = vmatprep.subr.bf16.mxu0 %v2177_v22  ;;  %1288 = vmatprep.subr.bf16.mxu1 %v2180_v23 }
 0x16e   : > { %1248 = vmatpush2.bf16.xpose.msra.mxu0 %v2175_v24  ;;  %1289 = vmatpush2.bf16.xpose.msra.mxu1 %v2178_v25 }
 0x16f   : > { %1249 = vmatprep.subr.bf16.mxu0 %v2183_v26  ;;  %1290 = vmatprep.subr.bf16.mxu1 %v2186_v27 }
 0x176   : > { %1250 = vmatpush2.bf16.xpose.msra.mxu0 %v2181_v28  ;;  %1291 = vmatpush2.bf16.xpose.msra.mxu1 %v2184_v29 }
 0x177   : > { %1251 = vmatprep.subr.bf16.mxu0 %v2189_v30  ;;  %1292 = vmatprep.subr.bf16.mxu1 %v2192_v31 }
 0x17e   : > { %1252 = vmatpush2.bf16.xpose.msra.mxu0 %v2187_v32  ;;  %1293 = vmatpush2.bf16.xpose.msra.mxu1 %v2190_v34 }
 0x185   : > { %1254 = vmatmul.mubr.bf16.vlgmr.msra.gmra.mxu0 %v2673_v54  ;;  %1295 = vmatmul.mubr.bf16.vlgmr.msra.gmra.mxu1 %v2725_v33  ;;  %v1314_v33 = vsub.s32 %v1311_v49, %v2665_v46 }
 0x1c5   : > { %v1173_v35 = vpop.f32.mrf.mxu0  ;;  %v1214_v36 = vpop.f32.mrf.mxu1 }
 0x1c6   : > { %v1215_v37 = vadd.f32 %v1214_v36, %v1173_v35 }
 0x1c7   : > { %v1175_v38 = vpop.f32.mrf.mxu0  ;;  %v1216_v39 = vpop.f32.mrf.mxu1 }
 0x1c8   : > { %v1217_v40 = vadd.f32 %v1216_v39, %v1175_v38 }
 0x1c9   : > { %v1177_v41 = vpop.f32.mrf.mxu0  ;;  %v1218_v42 = vpop.f32.mrf.mxu1 }
 0x1ca   : > { %v1307_v43 = vcombine.low %v1215_v37, %v1217_v40 }
 0x1cb   : > { %v1178_v44 = vpop.f32.mrf.mxu0  ;;  %v1219_v45 = vpop.f32.mrf.mxu1 }
 0x1cc   : > { %v1315_v61 = vrot.slane %v1307_v43, %v1314_v33 }
 0x245   : > { %v1255_v50 = vpop.f32.mrf.mxu0  ;;  %v1296_v51 = vpop.f32.mrf.mxu1 }
 0x246   : > { %v1297_v53 = vadd.f32 %v1296_v51, %v1255_v50 }
 0x247   : > { %v1257_v52 = vpop.f32.mrf.mxu0  ;;  %v1298_v54 = vpop.f32.mrf.mxu1 }
 0x248   : > { %v1299_v55 = vadd.f32 %v1298_v54, %v1257_v52 }
 0x249   : > { %v1259_v56 = vpop.f32.mrf.mxu0  ;;  %v1300_v57 = vpop.f32.mrf.mxu1 }
 0x24a   : > { %v1308_v58 = vcombine.low %v1297_v53, %v1299_v55 }
 0x24b   : > { %v1260_v59 = vpop.f32.mrf.mxu0  ;;  %v1301_v60 = vpop.f32.mrf.mxu1 }
 0x24c   : > { %v1322_v62 = vrot.slane %v1308_v58, %v1314_v33 }
 0x24e   : > { %v1323_v0 = vcombine.low %v1315_v61, %v1322_v62  ;;  %1330 = sbr.rel (%p1883_p5) target bundleno = 859 (0x35b), region = 64 }
 0x250   : > { %v1325_v1 = vadd.f32 %v1323_v0, %v340_v63 }
 0x252   : > { %1326 = vst [vmem:[#allocation2] sm:$0xff] %v1325_v1 }
 0x253   : > { %v2193_v2 = vld [vmem:[#allocation9 + $0xe4] ss:$16 sps:$4 sm:$0xff]   ;;  %v2195_v3 = vld [vmem:[#allocation9 + $0xec] ss:$16 sps:$4 sm:$0xff]   ;;  %v2197_v46 = vld [vmem:[#allocation9 + $0xe0] ss:$16 sps:$4 sm:$0xff]  }
 0x254   : > { %1557 = vmatprep.subr.bf16.mxu0 %v2193_v2  ;;  %v2198_v4 = vld [vmem:[#allocation9 + $0xe8] ss:$16 sps:$4 sm:$0xff]   ;;  %1597 = vmatprep.subr.bf16.mxu1 %v2195_v3  ;;  %v2199_v5 = vld [vmem:[#allocation9 + $0xc4] ss:$16 sps:$4 sm:$0xff]   ;;  %v2201_v6 = vld [vmem:[#allocation9 + $0xcc] ss:$16 sps:$4 sm:$0xff]  }
 0x255   : > { %1558 = vmatpush1.bf16.xpose.msra.mxu0 %v2197_v46  ;;  %1598 = vmatpush1.bf16.xpose.msra.mxu1 %v2198_v4  ;;  %v2203_v7 = vld [vmem:[#allocation9 + $0xc0] ss:$16 sps:$4 sm:$0xff]   ;;  %v2204_v8 = vld [vmem:[#allocation9 + $0xc8] ss:$16 sps:$4 sm:$0xff]   ;;  %v2205_v9 = vld [vmem:[#allocation9 + $0xa4] ss:$16 sps:$4 sm:$0xff]  }
 0x256   : > { %1559 = vmatprep.subr.bf16.mxu0 %v2199_v5  ;;  %1599 = vmatprep.subr.bf16.mxu1 %v2201_v6  ;;  %v2207_v10 = vld [vmem:[#allocation9 + $0xac] ss:$16 sps:$4 sm:$0xff]   ;;  %v2209_v11 = vld [vmem:[#allocation9 + $0xa0] ss:$16 sps:$4 sm:$0xff]   ;;  %v2210_v12 = vld [vmem:[#allocation9 + $0xa8] ss:$16 sps:$4 sm:$0xff]  }
 0x257   : > { %v2211_v13 = vld [vmem:[#allocation9 + $0x84] ss:$16 sps:$4 sm:$0xff]   ;;  %v2213_v14 = vld [vmem:[#allocation9 + $0x8c] ss:$16 sps:$4 sm:$0xff]   ;;  %v2215_v18 = vld [vmem:[#allocation9 + $0x80] ss:$16 sps:$4 sm:$0xff]  }
 0x258   : > { %v2216_v19 = vld [vmem:[#allocation9 + $0x88] ss:$16 sps:$4 sm:$0xff]   ;;  %v2217_v22 = vld [vmem:[#allocation9 + $0x64] ss:$16 sps:$4 sm:$0xff]   ;;  %v2219_v23 = vld [vmem:[#allocation9 + $0x6c] ss:$16 sps:$4 sm:$0xff]  }
 0x259   : > { %v1331_v15 = vld [vmem:[#allocation2] sm:$0xff]  ;;  %v2222_v28 = vld [vmem:[#allocation9 + $0x68] ss:$16 sps:$4 sm:$0xff]   ;;  %v2223_v29 = vld [vmem:[#allocation9 + $0x44] ss:$16 sps:$4 sm:$0xff]  }
 0x25a   : > { %v1340_v16 = vrot.slane %v1331_v15, %v1314_v33  ;;  %v1333_v17 = vcombine.high %v1331_v15, %v1331_v15  ;;  %v2221_v27 = vld [vmem:[#allocation9 + $0x60] ss:$16 sps:$4 sm:$0xff]   ;;  %v2225_v30 = vld [vmem:[#allocation9 + $0x4c] ss:$16 sps:$4 sm:$0xff]   ;;  %v2228_v32 = vld [vmem:[#allocation9 + $0x48] ss:$16 sps:$4 sm:$0xff]  }
 0x25b   : > { %v2227_v31 = vld [vmem:[#allocation9 + $0x40] ss:$16 sps:$4 sm:$0xff]   ;;  %v2229_v34 = vld [vmem:[#allocation9 + $0x24] ss:$16 sps:$4 sm:$0xff]   ;;  %v2231_v35 = vld [vmem:[#allocation9 + $0x2c] ss:$16 sps:$4 sm:$0xff]  }
 0x25c   : > { %v1348_v20 = vcombine.high %v1340_v16, %v1340_v16  ;;  %v1347_v21 = vrot.slane %v1333_v17, %v1314_v33  ;;  %v2233_v36 = vld [vmem:[#allocation9 + $0x20] ss:$16 sps:$4 sm:$0xff]   ;;  %v2234_v37 = vld [vmem:[#allocation9 + $0x28] ss:$16 sps:$4 sm:$0xff]   ;;  %v2235_v38 = vld [vmem:[#allocation9 + $0x4] ss:$16 sps:$4 sm:$0xff]   ;;  %v1354_v42 = vpack.c.bf16 %v1340_v16, %v1340_v16 }
 0x25d   : > { %1560 = vmatpush1.bf16.xpose.msra.mxu0 %v2203_v7  ;;  %1600 = vmatpush1.bf16.xpose.msra.mxu1 %v2204_v8  ;;  %v2237_v39 = vld [vmem:[#allocation9 + $0xc] ss:$16 sps:$4 sm:$0xff]   ;;  %v2239_v40 = vld [vmem:[#allocation9] ss:$16 sps:$4 sm:$0xff]   ;;  %v2240_v41 = vld [vmem:[#allocation9 + $0x8] ss:$16 sps:$4 sm:$0xff]  }
 0x25e   : > { %1561 = vmatprep.subr.bf16.mxu0 %v2205_v9  ;;  %1601 = vmatprep.subr.bf16.mxu1 %v2207_v10  ;;  %v1355_v24 = vpack.c.bf16 %v1348_v20, %v1348_v20  ;;  %v1349_v25 = vcombine.high %v1347_v21, %v1347_v21  ;;  %v1356_v43 = vpack.c.bf16 %v1347_v21, %v1347_v21  ;;  %v1884_v44 = vld [vmem:[%s2829_s4] ss:$0 sm:$0xff] }
 0x260   : > { %v1357_v26 = vpack.c.bf16 %v1349_v25, %v1349_v25  ;;  %1589 = vmatprep.mubr.bf16.mxu0 %v1355_v24 }
 0x262   : > { %1629 = vmatprep.mubr.bf16.mxu1 %v1357_v26 }
 0x265   : > { %1562 = vmatpush1.bf16.xpose.msra.mxu0 %v2209_v11  ;;  %1602 = vmatpush1.bf16.xpose.msra.mxu1 %v2210_v12 }
 0x266   : > { %1563 = vmatprep.subr.bf16.mxu0 %v2211_v13  ;;  %1603 = vmatprep.subr.bf16.mxu1 %v2213_v14 }
 0x26d   : > { %1564 = vmatpush1.bf16.xpose.msra.mxu0 %v2215_v18  ;;  %1604 = vmatpush1.bf16.xpose.msra.mxu1 %v2216_v19 }
 0x26e   : > { %1565 = vmatprep.subr.bf16.mxu0 %v2217_v22  ;;  %1605 = vmatprep.subr.bf16.mxu1 %v2219_v23 }
 0x275   : > { %1566 = vmatpush1.bf16.xpose.msra.mxu0 %v2221_v27  ;;  %1606 = vmatpush1.bf16.xpose.msra.mxu1 %v2222_v28 }
 0x276   : > { %1567 = vmatprep.subr.bf16.mxu0 %v2223_v29  ;;  %1607 = vmatprep.subr.bf16.mxu1 %v2225_v30 }
 0x27d   : > { %1568 = vmatpush1.bf16.xpose.msra.mxu0 %v2227_v31  ;;  %1608 = vmatpush1.bf16.xpose.msra.mxu1 %v2228_v32 }
 0x27e   : > { %1569 = vmatprep.subr.bf16.mxu0 %v2229_v34  ;;  %1609 = vmatprep.subr.bf16.mxu1 %v2231_v35 }
 0x285   : > { %1570 = vmatpush1.bf16.xpose.msra.mxu0 %v2233_v36  ;;  %1610 = vmatpush1.bf16.xpose.msra.mxu1 %v2234_v37 }
 0x286   : > { %1571 = vmatprep.subr.bf16.mxu0 %v2235_v38  ;;  %1611 = vmatprep.subr.bf16.mxu1 %v2237_v39 }
 0x28d   : > { %1572 = vmatpush1.bf16.xpose.msra.mxu0 %v2239_v40  ;;  %1612 = vmatpush1.bf16.xpose.msra.mxu1 %v2240_v41 }
 0x294   : > { %1590 = vmatmul.mubr.bf16.vlgmr.msra.gmra.mxu0 %v1354_v42  ;;  %1630 = vmatmul.mubr.bf16.vlgmr.msra.gmra.mxu1 %v1356_v43 }
 0x354   : > { %v1591_v45 = vpop.f32.mrf.mxu0  ;;  %v1631_v47 = vpop.f32.mrf.mxu1 }
 0x355   : > { %v1592_v48 = vadd.f32 %v1884_v44, %v1591_v45 }
 0x356   : > { %v1593_v49 = vpop.f32.mrf.mxu0  ;;  %v1633_v50 = vpop.f32.mrf.mxu1 }
 0x357   : > { %v1632_v51 = vadd.f32 %v1631_v47, %v1592_v48 }
 0x358   : > { %v1594_v52 = vpop.f32.mrf.mxu0  ;;  %v1634_v54 = vpop.f32.mrf.mxu1 }
 0x359   : > { %1637 = vst [vmem:[#allocation11] sm:$0x3] %v1632_v51 }
 0x35a   : > { %v1595_v33 = vpop.f32.mrf.mxu0  ;;  %v1635_v53 = vpop.f32.mrf.mxu1 }
 0x35b PF: > { %p1958_p6 = scmp.eq.s32.totalorder %s2486_s22, 1  ;;  %s2436_s12 = smov [#allocation11]  }
 0x35c   : > { %s1645_s16 = sshll.u32 %s2436_s12, 4  ;;  %s1646_s16 = int_to_ptr.vmem [resolvable:$true] %s1645_s16 }
 0x35d   : > { %s2350_s26 = scalar_lea.vmem %s1646_s16, 32  ;;  %p2357_p2 = scmp.lt.s32.totalorder %s1646_s16, %s1646_s16 }
 0x35e   : > { %p2351_p9 = scmp.ne.s32.totalorder %s1646_s16, %s2350_s26  ;;  %p2358_p3 = scmp.lt.s32.totalorder %s2350_s26, %s2350_s26 }
 0x360   : > { %p2352_p12 = pnand %p2351_p9, %p1958_p6  ;;  %p2359_p13 = por %p2358_p3, %p2357_p2 }
 0x362   : > { %p2353_p0 = pneg %p2352_p12 }
 0x364   : > { %p2360_p7 = pnand %p2359_p13, %p2353_p0 }
 0x366   : > { %2363 = shalt.err (!%p2360_p7)
}
 0x367   : > { %1936 = dma.vmem_to_hbm [thread:$0]  (%p1958_p6), %s1646_s16, 32, %s2830_s5, [#allocation5]  }
 0x368   : > { %2407 = dma.done.wait (%p1958_p6), [#allocation5], 32  }
 0x369   : > { %2409 = vsyncadd (%p1958_p6), [#allocation5], 4294967264 }
 0x36a PF: > { %p20_p8 = scmp.ge.s32.totalorder %s2533_s13, 4   ;;  %s2845_s18 = smov %s2416_s19 }
 0x36b   : > { %s2846_s19 = smov %s2420_s20  ;;  %s2847_s20 = smov %s2546_s17 }
 0x36c   : > { %s2848_s21 = smov %s2533_s13  ;;  %22 = sbr.rel (!%p20_p8) target bundleno = 7 (0x7), region = 106 }
 0x371   :  { %1658 = vsyncpa [#allocation4], 1 }
 0x372   :  { %1660 = vsyncpa [#allocation4 + $0x1], 1 }
 0x373   :  { %1661 = vsyncpa [#allocation7], 1 }
 0x374   :  { %1663 = vsyncpa [#allocation7 + $0x1], 1 }
 0x375   :  { %1664 = vsyncpa [#allocation10], 1 }
 0x376   :  { %1665 = vsyncpa [#allocation5], 1 }
 0x377   :  { %1667 = vsyncpa [#allocation5 + $0x1], 1 }

</bundles_post_ra>
